<compile_context>
chip_gen: v7x
topology: tpu7x:2x2x1
jax: 0.10.0
libtpu: 0.0.40
codegen_flags: <defaults>
</compile_context>

<pallas_src>
import functools

import jax
import jax.numpy as jnp
from jax.experimental import pallas as pl
from jax.experimental.pallas import tpu as pltpu


def _instance_counter_kernel(x_ref, v_ref, c0_ref, o_ref, acc_ref, *,
                             m_total, tile_m, needs_mask):
    # x_ref : (Bblk, Cin, TM)  activation tile, spatial on lanes
    # v_ref : (Cin, 1)         folded weight column  v = lin_w @ conv_w
    # c0_ref: (1, 1)           folded bias           c0 = lin_w @ conv_b + lin_b
    # o_ref : (Bblk, 1, 1)     sigmoid(count logit) per batch element
    # acc_ref: VMEM (Bblk, Cin, 1) f32 -- running spatial sum of x
    i = pl.program_id(1)
    last = pl.num_programs(1) - 1

    @pl.when(i == 0)
    def _init():
        acc_ref[...] = jnp.zeros_like(acc_ref)

    def accumulate(mask_tail):
        x_tile = x_ref[...].astype(jnp.float32)              # (Bblk, Cin, TM)
        if mask_tail:
            # Ragged last tile: zero the out-of-range spatial columns BEFORE
            # accumulating (the OOB block region is undefined data).
            col = jax.lax.broadcasted_iota(jnp.int32, x_tile.shape, dimension=2)
            in_range = (i * tile_m + col) < m_total
            x_tile = jnp.where(in_range, x_tile, 0.0)
        acc_ref[...] += jnp.sum(x_tile, axis=2, keepdims=True)  # (Bblk, Cin, 1)

    if needs_mask:
        # Mask only on the final spatial tile; steady-state steps stay clean.
        @pl.when(i < last)
        def _steady():
            accumulate(False)

        @pl.when(i == last)
        def _tail():
            accumulate(True)
    else:
        accumulate(False)

    @pl.when(i == last)
    def _finalize():
        # pooled_x[c] = mean_p x[c, p]; logit = v . pooled_x + c0 (conv & linear
        # folded together since global-average-pool commutes with a 1x1 conv).
        pooled = acc_ref[...] * (1.0 / m_total)                # (Bblk, Cin, 1)
        z = jnp.sum(pooled * v_ref[...][None, :, :], axis=1, keepdims=True)
        z = z + c0_ref[...]                                    # (Bblk, 1, 1)
        o_ref[...] = jax.nn.sigmoid(z).astype(o_ref.dtype)


def _pick_batch_block(n, cin, tm, itemsize, budget_bytes=4 << 20):
    """Largest divisor of n whose (bblk, cin, tm) tile stays under budget."""
    tile_bytes = max(cin * tm * itemsize, 1)
    max_b = max(1, budget_bytes // tile_bytes)
    best = 1
    for d in range(1, n + 1):
        if n % d == 0 and d <= max_b:
            best = d
    return best


@functools.partial(jax.jit, static_argnames=("tile_m",))
def instance_counter_forward(x, conv_w, conv_b, lin_w, lin_b, tile_m=8192):
    """InstanceCounter.forward.

    x:      (N, Cin, H, W)   NCHW, like the PyTorch module
    conv_w: (Cout, Cin)      nn.Conv2d(Cin, Cout, 1) weight (1x1 taps squeezed)
    conv_b: (Cout,)          conv bias
    lin_w:  (1, Cout)        nn.Linear(Cout, 1) weight (PyTorch layout)
    lin_b:  (1,)             linear bias
    returns (N, 1)           sigmoid output
    """
    n, cin, h, w = x.shape
    m = h * w

    # (N, Cin, H, W) -> (N, Cin, M): pure reshape, no transpose, no pad.
    x3 = x.reshape(n, cin, m)

    # Spatial tile on lanes: multiple of 128, or the full extent.
    if m <= tile_m:
        tm = m
    else:
        tm = max((tile_m // 128) * 128, 128)
    grid_m = pl.cdiv(m, tm)
    needs_mask = (m % tm) != 0

    # Batch blocking: amortize per-grid-step overhead when H*W is small.
    bblk = _pick_batch_block(n, cin, tm, jnp.dtype(x3.dtype).itemsize)
    grid_n = n // bblk

    # Fold conv + linear: logit = (lin_w @ conv_w) . mean(x) + lin_w @ conv_b + lin_b
    w1 = conv_w.astype(jnp.float32)                    # (Cout, Cin)
    b1 = conv_b.astype(jnp.float32)                    # (Cout,)
    w2 = lin_w.astype(jnp.float32)                     # (1, Cout)
    b2 = lin_b.astype(jnp.float32)                     # (1,)
    v = (w2 @ w1).reshape(cin, 1)                      # (Cin, 1) column
    c0 = (w2 @ b1 + b2).reshape(1, 1)                  # (1, 1)

    kernel = functools.partial(
        _instance_counter_kernel,
        m_total=m, tile_m=tm, needs_mask=needs_mask)

    out = pl.pallas_call(
        kernel,
        out_shape=jax.ShapeDtypeStruct((n, 1, 1), x.dtype),
        grid_spec=pltpu.PrefetchScalarGridSpec(
            num_scalar_prefetch=0,
            grid=(grid_n, grid_m),
            in_specs=[
                pl.BlockSpec((bblk, cin, tm), lambda b, i: (b, 0, i)),  # x tile
                pl.BlockSpec((cin, 1), lambda b, i: (0, 0)),            # v
                pl.BlockSpec((1, 1), lambda b, i: (0, 0)),              # c0
            ],
            out_specs=pl.BlockSpec((bblk, 1, 1), lambda b, i: (b, 0, 0)),
            scratch_shapes=[pltpu.VMEM((bblk, cin, 1), jnp.float32)],
        ),
        compiler_params=pltpu.CompilerParams(
            dimension_semantics=("parallel", "arbitrary"),
        ),
    )(x3, v, c0)

    return out.reshape(n, 1)


def init_params(key, in_chans, out_chans, dtype=jnp.float32):
    """Deterministic init mimicking nn.Conv2d / nn.Linear defaults."""
    k1, k2, k3, k4 = jax.random.split(key, 4)
    conv_bound = 1.0 / jnp.sqrt(in_chans * 1 * 1)
    conv_w = jax.random.uniform(k1, (out_chans, in_chans), dtype,
                                minval=-conv_bound, maxval=conv_bound)
    conv_b = jax.random.uniform(k2, (out_chans,), dtype,
                                minval=-conv_bound, maxval=conv_bound)
    lin_bound = 1.0 / jnp.sqrt(out_chans)
    lin_w = jax.random.uniform(k3, (1, out_chans), dtype,
                               minval=-lin_bound, maxval=lin_bound)
    lin_b = jax.random.uniform(k4, (1,), dtype,
                               minval=-lin_bound, maxval=lin_bound)
    return conv_w, conv_b, lin_w, lin_b


if __name__ == "__main__":
    key = jax.random.PRNGKey(0)
    k_x, k_p = jax.random.split(key)

    # Small shapes consistent with the module: NCHW, in_chans=54, out=36.
    N, CIN, COUT, H, W = 2, 54, 36, 16, 16
    x = jax.random.normal(k_x, (N, CIN, H, W), dtype=jnp.float32)
    conv_w, conv_b, lin_w, lin_b = init_params(k_p, CIN, COUT)

    out = instance_counter_forward(x, conv_w, conv_b, lin_w, lin_b)
    out = jax.block_until_ready(out)

    # Pure-JAX reference: conv1x1 -> global avg pool -> linear -> sigmoid.
    ref_conv = jnp.einsum("nchw,oc->nohw", x, conv_w) + conv_b[None, :, None, None]
    ref_pool = ref_conv.mean(axis=(2, 3))                      # (N, Cout)
    ref = jax.nn.sigmoid(ref_pool @ lin_w.T + lin_b[None, :])  # (N, 1)

    assert out.shape == (N, 1)
    assert jnp.allclose(out, ref, atol=1e-5, rtol=1e-5)

    print("KERNEL_OK")
</pallas_src>

<mosaic_0001>
module attributes {stable_mosaic.version = 11 : i64} {
  func.func @_instance_counter_kernel(%arg0: i32, %arg1: i32, %arg2: memref<2x54x256xf32, #tpu.memory_space<vmem>>, %arg3: memref<54x1xf32, #tpu.memory_space<vmem>>, %arg4: memref<1x1xf32, #tpu.memory_space<vmem>>, %arg5: memref<2x1x1xf32, #tpu.memory_space<vmem>>, %arg6: memref<2x54x1xf32, #tpu.memory_space<vmem>>) attributes {dimension_semantics = [#tpu.dimension_semantics<parallel>, #tpu.dimension_semantics<arbitrary>], iteration_bounds = array<i64: 1, 1>, scalar_prefetch = 0 : i64, scratch_operands = 1 : i64, tpu.core_type = #tpu.core_type<tc>, window_params = [{transform_indices = @transform_0, window_bounds = array<i64: 2, 54, 256>}, {pipeline_mode = #tpu.pipeline_mode<synchronous>, transform_indices = @transform_1, window_bounds = array<i64: 54, 1>}, {pipeline_mode = #tpu.pipeline_mode<synchronous>, transform_indices = @transform_2, window_bounds = array<i64: 1, 1>}, {transform_indices = @transform_3, window_bounds = array<i64: 2, 1, 1>}]} {
    %c0_i32 = arith.constant 0 : i32
    %0 = arith.cmpi eq, %arg1, %c0_i32 : i32
    %1 = arith.extui %0 : i1 to i32
    %c0_i32_0 = arith.constant 0 : i32
    %2 = arith.cmpi ne, %1, %c0_i32_0 : i32
    scf.if %2 {
      %cst_11 = arith.constant 0.000000e+00 : f32
      %12 = vector.broadcast %cst_11 : f32 to vector<2x54x1xf32>
      %c0_12 = arith.constant 0 : index
      %c0_13 = arith.constant 0 : index
      %c0_14 = arith.constant 0 : index
      %13 = vector.load %arg6[%c0_12, %c0_13, %c0_14] : memref<2x54x1xf32, #tpu.memory_space<vmem>>, vector<2x54x1xf32>
      tpu.vector_store %arg6[%c0_12, %c0_13, %c0_14], %12 {strides = array<i32>} : memref<2x54x1xf32, #tpu.memory_space<vmem>>, vector<2x54x1xf32>,
    } else {
    }
    %c0 = arith.constant 0 : index
    %c0_1 = arith.constant 0 : index
    %c0_2 = arith.constant 0 : index
    %3 = vector.load %arg2[%c0, %c0_1, %c0_2] : memref<2x54x256xf32, #tpu.memory_space<vmem>>, vector<2x54x256xf32>
    %c0_3 = arith.constant 0 : index
    %c0_4 = arith.constant 0 : index
    %c0_5 = arith.constant 0 : index
    %4 = vector.load %arg6[%c0_3, %c0_4, %c0_5] : memref<2x54x1xf32, #tpu.memory_space<vmem>>, vector<2x54x1xf32>
    %cst = arith.constant dense<0.000000e+00> : vector<2x54xf32>
    %5 = vector.multi_reduction <add>, %3, %cst [2] : vector<2x54x256xf32> to vector<2x54xf32>
    %6 = vector.shape_cast %5 : vector<2x54xf32> to vector<2x54x1xf32>
    %7 = arith.addf %4, %6 : vector<2x54x1xf32>
    %c0_6 = arith.constant 0 : index
    %c0_7 = arith.constant 0 : index
    %c0_8 = arith.constant 0 : index
    %8 = vector.load %arg6[%c0_6, %c0_7, %c0_8] : memref<2x54x1xf32, #tpu.memory_space<vmem>>, vector<2x54x1xf32>
    tpu.vector_store %arg6[%c0_6, %c0_7, %c0_8], %7 {strides = array<i32>} : memref<2x54x1xf32, #tpu.memory_space<vmem>>, vector<2x54x1xf32>,
    %c0_i32_9 = arith.constant 0 : i32
    %9 = arith.cmpi eq, %arg1, %c0_i32_9 : i32
    %10 = arith.extui %9 : i1 to i32
    %c0_i32_10 = arith.constant 0 : i32
    %11 = arith.cmpi ne, %10, %c0_i32_10 : i32
    scf.if %11 {
      %c0_11 = arith.constant 0 : index
      %c0_12 = arith.constant 0 : index
      %c0_13 = arith.constant 0 : index
      %12 = vector.load %arg6[%c0_11, %c0_12, %c0_13] : memref<2x54x1xf32, #tpu.memory_space<vmem>>, vector<2x54x1xf32>
      %cst_14 = arith.constant 3.906250e-03 : f32
      %13 = vector.broadcast %cst_14 : f32 to vector<2x54x1xf32>
      %14 = arith.mulf %12, %13 : vector<2x54x1xf32>
      %c0_15 = arith.constant 0 : index
      %c0_16 = arith.constant 0 : index
      %15 = vector.load %arg3[%c0_15, %c0_16] : memref<54x1xf32, #tpu.memory_space<vmem>>, vector<54x1xf32>
      %16 = vector.shape_cast %15 : vector<54x1xf32> to vector<1x54x1xf32>
      %17 = vector.broadcast %16 : vector<1x54x1xf32> to vector<2x54x1xf32>
      %18 = arith.mulf %14, %17 : vector<2x54x1xf32>
      %cst_17 = arith.constant dense<0.000000e+00> : vector<2x1xf32>
      %19 = vector.multi_reduction <add>, %18, %cst_17 [1] : vector<2x54x1xf32> to vector<2x1xf32>
      %20 = vector.shape_cast %19 : vector<2x1xf32> to vector<2x1x1xf32>
      %c0_18 = arith.constant 0 : index
      %c0_19 = arith.constant 0 : index
      %21 = vector.load %arg4[%c0_18, %c0_19] : memref<1x1xf32, #tpu.memory_space<vmem>>, vector<1x1xf32>
      %22 = vector.shape_cast %21 : vector<1x1xf32> to vector<1x1x1xf32>
      %23 = vector.broadcast %22 : vector<1x1x1xf32> to vector<2x1x1xf32>
      %24 = arith.addf %20, %23 : vector<2x1x1xf32>
      %25 = arith.negf %24 : vector<2x1x1xf32>
      %26 = math.exp %25 : vector<2x1x1xf32>
      %cst_20 = arith.constant 1.000000e+00 : f32
      %27 = vector.broadcast %cst_20 : f32 to vector<2x1x1xf32>
      %28 = arith.addf %27, %26 : vector<2x1x1xf32>
      %29 = arith.divf %27, %28 : vector<2x1x1xf32>
      %c0_21 = arith.constant 0 : index
      %c0_22 = arith.constant 0 : index
      %c0_23 = arith.constant 0 : index
      %30 = vector.load %arg5[%c0_21, %c0_22, %c0_23] : memref<2x1x1xf32, #tpu.memory_space<vmem>>, vector<2x1x1xf32>
      tpu.vector_store %arg5[%c0_21, %c0_22, %c0_23], %29 {strides = array<i32>} : memref<2x1x1xf32, #tpu.memory_space<vmem>>, vector<2x1x1xf32>,
    } else {
    }
    return
  }
  func.func @transform_0(%arg0: i32, %arg1: i32) -> (i32, i32, i32) {
    %c0_i32 = arith.constant 0 : i32
    %c0_i32_0 = arith.constant 0 : i32
    return %arg0, %c0_i32, %arg1 : i32, i32, i32
  }
  func.func @transform_1(%arg0: i32, %arg1: i32) -> (i32, i32) {
    %c0_i32 = arith.constant 0 : i32
    %c0_i32_0 = arith.constant 0 : i32
    %c0_i32_1 = arith.constant 0 : i32
    return %c0_i32, %c0_i32_0 : i32, i32
  }
  func.func @transform_2(%arg0: i32, %arg1: i32) -> (i32, i32) {
    %c0_i32 = arith.constant 0 : i32
    %c0_i32_0 = arith.constant 0 : i32
    %c0_i32_1 = arith.constant 0 : i32
    return %c0_i32, %c0_i32_0 : i32, i32
  }
  func.func @transform_3(%arg0: i32, %arg1: i32) -> (i32, i32, i32) {
    %c0_i32 = arith.constant 0 : i32
    %c0_i32_0 = arith.constant 0 : i32
    %c0_i32_1 = arith.constant 0 : i32
    return %arg0, %c0_i32, %c0_i32_0 : i32, i32, i32
  }
}

</mosaic_0001>

<bundles_post_ra>
// kernel: instance_counter_forward.1
= control target key start
LH: loop header
LB: loop body
LE: loop exit
PB: predicated region body
PF: predicated region fallthrough
CT: control target
= control target key end

     0   :  { %vm20_vm0 = vcmask 7168   ;;  %v278_v3 = vmov 0.0   ;;  %vm96_vm1 = vcmask 1045504   ;;  %vm27_vm2 = vcmask 5120   ;;  %s469_s0 = inlined_call_operand.vmem [shape: f32[2,54,256], index: 0, kind: input, shape index: {}]   ;;  %s470_s2 = inlined_call_operand.<no memory space> [shape: f32[1,1], index: 2, kind: input, shape index: {}]   ;;  %s471_s1 = inlined_call_operand.vmem [shape: f32[54,1], index: 1, kind: input, shape index: {}]   ;;  %s472_s3 = inlined_call_operand.vmem [shape: f32[2,1,1], index: 3, kind: output, shape index: {}]  }
   0x1   :  { %v50_v0 = vld [vmem:[%s469_s0 + $0x70] sm:$0xff]  ;;  %v51_v1 = vld [vmem:[%s469_s0 + $0x78] sm:$0xff]  ;;  %v36_v2 = vld [vmem:[%s469_s0] sm:$0xff]  ;;  %29 = vst.msk [vmem:[#allocation2 + $0x38] sm:$0xff] %vm20_vm0, %v278_v3  ;;  %v8_v47 = vstv %s470_s2  ;;  %vm260_vm3 = vcmask 0  }
   0x2   :  { %21 = vst.msk [vmem:[#allocation2] sm:$0xff] %vm20_vm0, %v278_v3  ;;  %22 = vst.msk [vmem:[#allocation2 + $0x8] sm:$0xff] %vm20_vm0, %v278_v3  ;;  %v102_v4 = vadd.f32 %v51_v1, %v50_v0  ;;  %v37_v5 = vld [vmem:[%s469_s0 + $0x8] sm:$0xff]  ;;  %v52_v6 = vld [vmem:[%s469_s0 + $0x80] sm:$0xff] }
   0x3   :  { %23 = vst.msk [vmem:[#allocation2 + $0x10] sm:$0xff] %vm20_vm0, %v278_v3  ;;  %24 = vst.msk [vmem:[#allocation2 + $0x18] sm:$0xff] %vm20_vm0, %v278_v3  ;;  %v53_v7 = vld [vmem:[%s469_s0 + $0x88] sm:$0xff]  ;;  %v78_v8 = vadd.f32 %v37_v5, %v36_v2  ;;  %v38_v9 = vld [vmem:[%s469_s0 + $0x10] sm:$0xff] }
   0x4   :  { %25 = vst.msk [vmem:[#allocation2 + $0x20] sm:$0xff] %vm20_vm0, %v278_v3  ;;  %26 = vst.msk [vmem:[#allocation2 + $0x28] sm:$0xff] %vm20_vm0, %v278_v3  ;;  %v39_v10 = vld [vmem:[%s469_s0 + $0x18] sm:$0xff]  ;;  %103 = vadd.xlane.f32.xlu1 %v102_v4  ;;  %v105_v11 = vadd.f32 %v53_v7, %v52_v6  ;;  %v54_v13 = vld [vmem:[%s469_s0 + $0x90] sm:$0xff] }
   0x5   :  { %30 = vst.msk [vmem:[#allocation2 + $0x40] sm:$0xff] %vm20_vm0, %v278_v3  ;;  %31 = vst.msk [vmem:[#allocation2 + $0x48] sm:$0xff] %vm20_vm0, %v278_v3  ;;  %79 = vadd.xlane.f32.xlu0 %v78_v8  ;;  %v81_v12 = vadd.f32 %v39_v10, %v38_v9  ;;  %v55_v14 = vld [vmem:[%s469_s0 + $0x98] sm:$0xff]  ;;  %v40_v15 = vld [vmem:[%s469_s0 + $0x20] sm:$0xff] }
   0x6   :  { %32 = vst.msk [vmem:[#allocation2 + $0x50] sm:$0xff] %vm20_vm0, %v278_v3  ;;  %33 = vst.msk [vmem:[#allocation2 + $0x58] sm:$0xff] %vm20_vm0, %v278_v3  ;;  %v41_v16 = vld [vmem:[%s469_s0 + $0x28] sm:$0xff]  ;;  %v108_v17 = vadd.f32 %v55_v14, %v54_v13  ;;  %v56_v19 = vld [vmem:[%s469_s0 + $0xa0] sm:$0xff] }
   0x7   :  { %34 = vst.msk [vmem:[#allocation2 + $0x60] sm:$0xff] %vm20_vm0, %v278_v3  ;;  %v84_v18 = vadd.f32 %v41_v16, %v40_v15  ;;  %v57_v20 = vld [vmem:[%s469_s0 + $0xa8] sm:$0xff]  ;;  %v42_v21 = vld [vmem:[%s469_s0 + $0x30] sm:$0xff]  ;;  %v43_v22 = vld [vmem:[%s469_s0 + $0x38] sm:$0xff] }
   0x8   :  { %106 = vadd.xlane.f32.xlu1 %v105_v11  ;;  %v111_v23 = vadd.f32 %v57_v20, %v56_v19  ;;  %v87_v24 = vadd.f32 %v43_v22, %v42_v21  ;;  %v58_v25 = vld [vmem:[%s469_s0 + $0xb0] sm:$0xff]  ;;  %v59_v26 = vld [vmem:[%s469_s0 + $0xb8] sm:$0xff]  ;;  %v44_v27 = vld [vmem:[%s469_s0 + $0x40] sm:$0xff]  ;;  %35 = vst.msk [vmem:[#allocation2 + $0x68] sm:$0x3f] %vm27_vm2, %v278_v3 }
   0x9   :  { %82 = vadd.xlane.f32.xlu0 %v81_v12  ;;  %v45_v28 = vld [vmem:[%s469_s0 + $0x48] sm:$0xff]  ;;  %v114_v29 = vadd.f32 %v59_v26, %v58_v25  ;;  %v60_v31 = vld [vmem:[%s469_s0 + $0xc0] sm:$0xff]  ;;  %v46_v33 = vld [vmem:[%s469_s0 + $0x50] sm:$0xff]  ;;  %28 = vst.msk [vmem:[#allocation2 + $0x30] sm:$0x3f] %vm27_vm2, %v278_v3 }
   0xa   :  { %v90_v30 = vadd.f32 %v45_v28, %v44_v27  ;;  %v61_v32 = vld [vmem:[%s469_s0 + $0xc8] sm:$0xff]  ;;  %v47_v34 = vld [vmem:[%s469_s0 + $0x58] sm:$0xff]  ;;  %v62_v35 = vld [vmem:[%s469_s0 + $0xd0] sm:$0x3f]  ;;  %9 = vst [vmem:[#allocation3] sm:$0x1] %v8_v47 }
   0xb   :  { %v63_v36 = vld [vmem:[%s469_s0 + $0xd8] sm:$0x3f]  ;;  %v48_v37 = vld [vmem:[%s469_s0 + $0x60] sm:$0x3f]  ;;  %v49_v38 = vld [vmem:[%s469_s0 + $0x68] sm:$0x3f]  ;;  %v117_v39 = vadd.f32 %v61_v32, %v60_v31  ;;  %v93_v40 = vadd.f32 %v47_v34, %v46_v33 }
   0xc   :  { %109 = vadd.xlane.f32.xlu1 %v108_v17  ;;  %v120_v41 = vsel %vm96_vm1, %v62_v35, 0.0  ;;  %v121_v42 = vsel %vm96_vm1, %v63_v36, 0.0  ;;  %v97_v43 = vsel %vm96_vm1, %v48_v37, 0.0  ;;  %v98_v44 = vsel %vm96_vm1, %v49_v38, 0.0  ;;  %v71_v48 = vld [vmem:[#allocation2 + $0x38] sm:$0xff]  ;;  %v64_v49 = vld [vmem:[#allocation2] sm:$0xff] }
   0xd   :  { %85 = vadd.xlane.f32.xlu0 %v84_v18  ;;  %v122_v45 = vadd.f32 %v121_v42, %v120_v41  ;;  %v99_v46 = vadd.f32 %v98_v44, %v97_v43  ;;  %v72_v54 = vld [vmem:[#allocation2 + $0x40] sm:$0xff]  ;;  %v65_v55 = vld [vmem:[#allocation2 + $0x8] sm:$0xff]  ;;  %v66_v61 = vld [vmem:[#allocation2 + $0x10] sm:$0xff] }
   0xe   :  { %v73_v60 = vld [vmem:[#allocation2 + $0x48] sm:$0xff]  ;;  %v74_v2 = vld [vmem:[#allocation2 + $0x50] sm:$0xff]  ;;  %v67_v3 = vld [vmem:[#allocation2 + $0x18] sm:$0xff] }
   0xf   :  { %v75_v8 = vld [vmem:[#allocation2 + $0x58] sm:$0xff]  ;;  %v68_v9 = vld [vmem:[#allocation2 + $0x20] sm:$0xff]  ;;  %v69_v22 = vld [vmem:[#allocation2 + $0x28] sm:$0xff] }
  0x10   :  { %112 = vadd.xlane.f32.xlu1 %v111_v23  ;;  %v76_v18 = vld [vmem:[#allocation2 + $0x60] sm:$0xff]  ;;  %v187_v25 = vld [vmem:[%s471_s1 + $0x8] sm:$0xff]  ;;  %v188_v36 = vld [vmem:[%s471_s1 + $0x10] sm:$0xff] }
  0x11   :  { %88 = vadd.xlane.f32.xlu0 %v87_v24  ;;  %v77_v34 = vld [vmem:[#allocation2 + $0x68] sm:$0x3f]  ;;  %v189_v41 = vld [vmem:[%s471_s1 + $0x18] sm:$0xff] }
  0x14   :  { %115 = vadd.xlane.f32.xlu1 %v114_v29 }
  0x15   :  { %91 = vadd.xlane.f32.xlu0 %v90_v30  ;;  %v186_v30 = vld [vmem:[%s471_s1] sm:$0xff] }
  0x18   :  { %118 = vadd.xlane.f32.xlu1 %v117_v39 }
  0x19   :  { %94 = vadd.xlane.f32.xlu0 %v93_v40  ;;  %v70_v40 = vld [vmem:[#allocation2 + $0x30] sm:$0x3f] }
  0x1c   :  { %123 = vadd.xlane.f32.xlu1 %v122_v45 }
  0x1d   :  { %100 = vadd.xlane.f32.xlu0 %v99_v46 }
  0x91   :  { %v104_v50 = vpop.xlane.xlu1 %103 }
  0x92   :  { %v132_v51 = vadd.f32 %v104_v50, %v71_v48  ;;  %v80_v52 = vpop.xlane.xlu0 %79  ;;  %v190_v50 = vld [vmem:[%s471_s1 + $0x20] sm:$0xff] }
  0x93   :  { %v125_v53 = vadd.f32 %v80_v52, %v64_v49 }
  0x94   :  { %148 = vst.msk [vmem:[#allocation2 + $0x38] sm:$0xff] %vm20_vm0, %v132_v51 }
  0x95   :  { %140 = vst.msk [vmem:[#allocation2] sm:$0xff] %vm20_vm0, %v125_v53  ;;  %v107_v56 = vpop.xlane.xlu1 %106 }
  0x96   :  { %v133_v57 = vadd.f32 %v107_v56, %v72_v54  ;;  %v83_v58 = vpop.xlane.xlu0 %82 }
  0x97   :  { %v126_v59 = vadd.f32 %v83_v58, %v65_v55 }
  0x98   :  { %149 = vst.msk [vmem:[#allocation2 + $0x40] sm:$0xff] %vm20_vm0, %v133_v57 }
  0x99   :  { %141 = vst.msk [vmem:[#allocation2 + $0x8] sm:$0xff] %vm20_vm0, %v126_v59  ;;  %v110_v62 = vpop.xlane.xlu1 %109 }
  0x9a   :  { %v134_v63 = vadd.f32 %v110_v62, %v73_v60  ;;  %v86_v0 = vpop.xlane.xlu0 %85 }
  0x9b   :  { %v127_v1 = vadd.f32 %v86_v0, %v66_v61  ;;  %v165_v15 = vld [vmem:[#allocation2 + $0x38] sm:$0xff] }
  0x9c   :  { %150 = vst.msk [vmem:[#allocation2 + $0x48] sm:$0xff] %vm20_vm0, %v134_v63  ;;  %v158_v19 = vld [vmem:[#allocation2] sm:$0xff]  ;;  %v179_v26 = vmul.f32 0.00390625, %v165_v15 }
  0x9d   :  { %142 = vst.msk [vmem:[#allocation2 + $0x10] sm:$0xff] %vm20_vm0, %v127_v1  ;;  %v113_v4 = vpop.xlane.xlu1 %112  ;;  %v172_v31 = vmul.f32 0.00390625, %v158_v19  ;;  %v191_v1 = vld [vmem:[%s471_s1 + $0x28] sm:$0xff] }
  0x9e   :  { %v135_v5 = vadd.f32 %v113_v4, %v74_v2  ;;  %v89_v6 = vpop.xlane.xlu0 %88  ;;  %v200_v45 = vmul.f32 %v186_v30, %v179_v26 }
  0x9f   :  { %v128_v7 = vadd.f32 %v89_v6, %v67_v3  ;;  %v166_v10 = vld [vmem:[#allocation2 + $0x40] sm:$0xff]  ;;  %v193_v51 = vmul.f32 %v186_v30, %v172_v31 }
  0xa0   :  { %151 = vst.msk [vmem:[#allocation2 + $0x50] sm:$0xff] %vm20_vm0, %v135_v5  ;;  %v159_v12 = vld [vmem:[#allocation2 + $0x8] sm:$0xff]  ;;  %v180_v20 = vmul.f32 0.00390625, %v166_v10  ;;  %v226_v62 = vsel %vm20_vm0, %v200_v45, 0.0 }
  0xa1   :  { %143 = vst.msk [vmem:[#allocation2 + $0x18] sm:$0xff] %vm20_vm0, %v128_v7  ;;  %v116_v11 = vpop.xlane.xlu1 %115  ;;  %v173_v23 = vmul.f32 0.00390625, %v159_v12  ;;  %v207_v4 = vsel %vm20_vm0, %v193_v51, 0.0 }
  0xa2   :  { %v136_v13 = vadd.f32 %v116_v11, %v75_v8  ;;  %v92_v14 = vpop.xlane.xlu0 %91  ;;  %v201_v39 = vmul.f32 %v187_v25, %v180_v20 }
  0xa3   :  { %v167_v16 = vld [vmem:[#allocation2 + $0x48] sm:$0xff]  ;;  %v129_v17 = vadd.f32 %v92_v14, %v68_v9  ;;  %v194_v44 = vmul.f32 %v187_v25, %v173_v23 }
  0xa4   :  { %v160_v21 = vld [vmem:[#allocation2 + $0x10] sm:$0xff]  ;;  %152 = vst.msk [vmem:[#allocation2 + $0x58] sm:$0xff] %vm20_vm0, %v136_v13  ;;  %v181_v29 = vmul.f32 0.00390625, %v167_v16  ;;  %v227_v56 = vsel %vm20_vm0, %v201_v39, 0.0 }
  0xa5   :  { %144 = vst.msk [vmem:[#allocation2 + $0x20] sm:$0xff] %vm20_vm0, %v129_v17  ;;  %v119_v24 = vpop.xlane.xlu1 %118  ;;  %v174_v32 = vmul.f32 0.00390625, %v160_v21  ;;  %v208_v60 = vsel %vm20_vm0, %v194_v44, 0.0  ;;  %v228_v2 = vadd.f32 %v227_v56, %v226_v62  ;;  %v192_v16 = vld [vmem:[%s471_s1 + $0x30] sm:$0x3f] }
  0xa6   :  { %v137_v27 = vadd.f32 %v119_v24, %v76_v18  ;;  %v95_v28 = vpop.xlane.xlu0 %94  ;;  %v202_v46 = vmul.f32 %v188_v36, %v181_v29  ;;  %v209_v9 = vadd.f32 %v208_v60, %v207_v4 }
  0xa7   :  { %v130_v33 = vadd.f32 %v95_v28, %v69_v22  ;;  %v168_v35 = vld [vmem:[#allocation2 + $0x50] sm:$0xff]  ;;  %v195_v52 = vmul.f32 %v188_v36, %v174_v32 }
  0xa8   :  { %v161_v37 = vld [vmem:[#allocation2 + $0x18] sm:$0xff]  ;;  %153 = vst.msk [vmem:[#allocation2 + $0x60] sm:$0xff] %vm20_vm0, %v137_v27  ;;  %v182_v38 = vmul.f32 0.00390625, %v168_v35  ;;  %v229_v63 = vsel %vm20_vm0, %v202_v46, 0.0  ;;  %v245_v46 = vld [vmem:[#allocation3] sm:$0x1] }
  0xa9   :  { %145 = vst.msk [vmem:[#allocation2 + $0x28] sm:$0xff] %vm20_vm0, %v130_v33  ;;  %v124_v42 = vpop.xlane.xlu1 %123  ;;  %v175_v43 = vmul.f32 0.00390625, %v161_v37  ;;  %v210_v5 = vsel %vm20_vm0, %v195_v52, 0.0  ;;  %v230_v10 = vadd.f32 %v229_v63, %v228_v2 }
  0xaa   :  { %v138_v47 = vadd.f32 %v124_v42, %v77_v34  ;;  %v101_v48 = vpop.xlane.xlu0 %100  ;;  %v203_v55 = vmul.f32 %v189_v41, %v182_v38  ;;  %v211_v15 = vadd.f32 %v210_v5, %v209_v9 }
  0xab   :  { %v169_v49 = vld [vmem:[#allocation2 + $0x58] sm:$0xff]  ;;  %v131_v53 = vadd.f32 %v101_v48, %v70_v40  ;;  %v196_v59 = vmul.f32 %v189_v41, %v175_v43 }
  0xac   :  { %v183_v54 = vmul.f32 0.00390625, %v169_v49  ;;  %154 = vst.msk [vmem:[#allocation2 + $0x68] sm:$0x3f] %vm27_vm2, %v138_v47  ;;  %v162_v57 = vld [vmem:[#allocation2 + $0x20] sm:$0xff]  ;;  %v231_v7 = vsel %vm20_vm0, %v203_v55, 0.0 }
  0xad   :  { %v176_v58 = vmul.f32 0.00390625, %v162_v57  ;;  %147 = vst.msk [vmem:[#allocation2 + $0x30] sm:$0x3f] %vm27_vm2, %v131_v53  ;;  %v212_v12 = vsel %vm20_vm0, %v196_v59, 0.0  ;;  %v232_v17 = vadd.f32 %v231_v7, %v230_v10 }
  0xae   :  { %v204_v61 = vmul.f32 %v190_v50, %v183_v54  ;;  %v213_v23 = vadd.f32 %v212_v12, %v211_v15 }
  0xaf   :  { %v170_v0 = vld [vmem:[#allocation2 + $0x60] sm:$0xff]  ;;  %v197_v3 = vmul.f32 %v190_v50, %v176_v58 }
  0xb0   :  { %v184_v6 = vmul.f32 0.00390625, %v170_v0  ;;  %v163_v8 = vld [vmem:[#allocation2 + $0x28] sm:$0xff]  ;;  %v233_v14 = vsel %vm20_vm0, %v204_v61, 0.0 }
  0xb1   :  { %v177_v11 = vmul.f32 0.00390625, %v163_v8  ;;  %v214_v20 = vsel %vm20_vm0, %v197_v3, 0.0  ;;  %v234_v25 = vadd.f32 %v233_v14, %v232_v17 }
  0xb2   :  { %v205_v13 = vmul.f32 %v191_v1, %v184_v6  ;;  %v215_v29 = vadd.f32 %v214_v20, %v213_v23 }
  0xb3   :  { %v171_v18 = vld [vmem:[#allocation2 + $0x68] sm:$0x3f]  ;;  %v198_v19 = vmul.f32 %v191_v1, %v177_v11 }
  0xb4   :  { %v235_v21 = vsel %vm20_vm0, %v205_v13, 0.0  ;;  %v185_v22 = vmul.f32 0.00390625, %v171_v18  ;;  %v164_v24 = vld [vmem:[#allocation2 + $0x30] sm:$0x3f] }
  0xb5   :  { %v216_v26 = vsel %vm20_vm0, %v198_v19, 0.0  ;;  %v178_v27 = vmul.f32 0.00390625, %v164_v24  ;;  %v236_v30 = vadd.f32 %v235_v21, %v234_v25 }
  0xb6   :  { %v206_v28 = vmul.f32 %v192_v16, %v185_v22  ;;  %v217_v32 = vadd.f32 %v216_v26, %v215_v29 }
  0xb7   :  { %v199_v31 = vmul.f32 %v192_v16, %v178_v27 }
  0xb8   :  { %v237_v33 = vsel %vm27_vm2, %v206_v28, 0.0 }
  0xb9   :  { %v238_v34 = vadd.f32 %v237_v33, %v236_v30  ;;  %v218_v35 = vsel %vm27_vm2, %v199_v31, 0.0 }
  0xba   :  { %v219_v36 = vadd.f32 %v218_v35, %v217_v32 }
  0xbb   :  { %v239_v37 = vrot.slane %v238_v34, 4 }
  0xbc   :  { %v220_v38 = vrot.slane %v219_v36, 4 }
  0xbd   :  { %v240_v39 = vadd.f32 %v239_v37, %v238_v34 }
  0xbe   :  { %v221_v40 = vadd.f32 %v220_v38, %v219_v36 }
  0xbf   :  { %v241_v41 = vrot.slane %v240_v39, 2 }
  0xc0   :  { %v222_v42 = vrot.slane %v221_v40, 2 }
  0xc1   :  { %v242_v43 = vadd.f32 %v241_v41, %v240_v39 }
  0xc2   :  { %v223_v44 = vadd.f32 %v222_v42, %v221_v40 }
  0xc3   :  { %v243_v45 = vrot.slane %v242_v43, 1 }
  0xc4   :  { %v224_v47 = vrot.slane %v223_v44, 1 }
  0xc5   :  { %v244_v48 = vadd.f32 %v243_v45, %v242_v43 }
  0xc6   :  { %v225_v49 = vadd.f32 %v224_v47, %v223_v44 }
  0xc7   :  { %v247_v50 = vadd.f32 %v245_v46, %v244_v48 }
  0xc8   :  { %v246_v51 = vadd.f32 %v245_v46, %v225_v49 }
  0xc9   :  { %v268_v52 = vmul.f32 -1.442695, %v247_v50 }
  0xca   :  { %v267_v53 = vmul.f32 -1.442695, %v246_v51 }
  0xcb   :  { %270 = vpow2.f32 %v268_v52 }
  0xcc   :  { %272 = vpow2.f32 %v267_v53 }
  0xd5   :  { %v271_v54 = vpop.eup %270 }
  0xd6   :  { %v273_v55 = vpop.eup %272  ;;  %v255_v56 = vadd.f32 1.0, %v271_v54 }
  0xd7   :  { %v254_v57 = vadd.f32 1.0, %v273_v55 }
  0xd8   :  { %274 = vrcp.f32 %v255_v56 }
  0xd9   :  { %276 = vrcp.f32 %v254_v57 }
  0xe2   :  { %v275_v58 = vpop.eup %274 }
  0xe3   :  { %v277_v59 = vpop.eup %276  ;;  %262 = vst.msk [vmem:[%s472_s3 + $0x1] sm:$0x1] %vm260_vm3, %v275_v58 }
  0xe4   :  { %261 = vst.msk [vmem:[%s472_s3] sm:$0x1] %vm260_vm3, %v277_v59 }

</bundles_post_ra>
